<compile_context>
chip_gen: v5e
topology: v5e:2x2
jax: 0.10.0
libtpu: 0.0.40
codegen_flags: <defaults>
</compile_context>

<pallas_src>
import jax
import jax.numpy as jnp
from jax.experimental import pallas as pl
from jax.experimental.pallas import tpu as pltpu


def _alpha_kernel(params_ref, out_ref):
    # Identity pass-through of the packed (3,) scalar parameters — this is the
    # entire forward() of the PyTorch module. Scalar SMEM loads/stores.
    for i in range(3):
        out_ref[i] = params_ref[i]


@jax.jit
def alpha_forward(logalpha, logalphaA, logalphaB):
    """Equivalent of Alpha.forward(): returns (logalpha, logalphaA, logalphaB)."""
    # Pack the three (1,) params into a single (3,) array: one SMEM input ref,
    # one SMEM output ref (aliased), instead of 3 + 3 tiny refs.
    packed = jnp.concatenate([logalpha, logalphaA, logalphaB]).astype(jnp.float32)

    smem_spec = pl.BlockSpec(memory_space=pltpu.SMEM)
    out = pl.pallas_call(
        _alpha_kernel,
        in_specs=[smem_spec],
        out_specs=smem_spec,
        out_shape=jax.ShapeDtypeStruct((3,), jnp.float32),
        input_output_aliases={0: 0},  # output aliases the packed input buffer
    )(packed)

    return out[0:1], out[1:2], out[2:3]


def init_alpha_params(key):
    """Deterministic parameter init mirroring `0.01 * torch.randn(1)` x3."""
    k1, k2, k3 = jax.random.split(key, 3)
    logalpha = 0.01 * jax.random.normal(k1, (1,), dtype=jnp.float32)
    logalphaA = 0.01 * jax.random.normal(k2, (1,), dtype=jnp.float32)
    logalphaB = 0.01 * jax.random.normal(k3, (1,), dtype=jnp.float32)
    return logalpha, logalphaA, logalphaB


if __name__ == "__main__":
    key = jax.random.PRNGKey(0)
    logalpha, logalphaA, logalphaB = init_alpha_params(key)

    out = alpha_forward(logalpha, logalphaA, logalphaB)
    out = jax.block_until_ready(out)

    # Sanity check: forward is an identity on the parameters.
    assert out[0].shape == (1,) and out[1].shape == (1,) and out[2].shape == (1,)
    assert jnp.allclose(out[0], logalpha)
    assert jnp.allclose(out[1], logalphaA)
    assert jnp.allclose(out[2], logalphaB)

    print("KERNEL_OK")
</pallas_src>

<mosaic_0001>
module attributes {stable_mosaic.version = 11 : i64} {
  func.func @_alpha_kernel(%arg0: memref<3xf32, #tpu.memory_space<smem>>, %arg1: memref<3xf32, #tpu.memory_space<smem>>) attributes {dimension_semantics = [], scalar_prefetch = 0 : i64, scratch_operands = 0 : i64, tpu.core_type = #tpu.core_type<tc>} {
    %c0 = arith.constant 0 : index
    %0 = memref.load %arg0[%c0] : memref<3xf32, #tpu.memory_space<smem>>
    %c0_0 = arith.constant 0 : index
    %1 = memref.load %arg1[%c0_0] : memref<3xf32, #tpu.memory_space<smem>>
    memref.store %0, %arg1[%c0_0] : memref<3xf32, #tpu.memory_space<smem>>
    %c1 = arith.constant 1 : index
    %2 = memref.load %arg0[%c1] : memref<3xf32, #tpu.memory_space<smem>>
    %c1_1 = arith.constant 1 : index
    %3 = memref.load %arg1[%c1_1] : memref<3xf32, #tpu.memory_space<smem>>
    memref.store %2, %arg1[%c1_1] : memref<3xf32, #tpu.memory_space<smem>>
    %c2 = arith.constant 2 : index
    %4 = memref.load %arg0[%c2] : memref<3xf32, #tpu.memory_space<smem>>
    %c2_2 = arith.constant 2 : index
    %5 = memref.load %arg1[%c2_2] : memref<3xf32, #tpu.memory_space<smem>>
    memref.store %4, %arg1[%c2_2] : memref<3xf32, #tpu.memory_space<smem>>
    return
  }
}

</mosaic_0001>

<bundles_post_ra>
// kernel: alpha_forward.1
= control target key start
LH: loop header
LB: loop body
LE: loop exit
PB: predicated region body
PF: predicated region fallthrough
CT: control target
= control target key end

     0   :  { %6 = vsyncpa [#allocation3], 0  ;;  %s97_s0 = inlined_call_operand.vmem [shape: f32[3], index: 0, kind: input, shape index: {}, may-alias: {0,1}]   ;;  %s98_s1 = inlined_call_operand.vmem [shape: f32[3], index: 1, kind: output, shape index: {}, may-alias: {0,1}]  }
   0x1   :  { %7 = vsyncpa [#allocation4], 0  ;;  %s13_s8 = sshll.u32 %s97_s0, 4  ;;  %s79_s9 = smov [#allocation2]   ;;  %s14_s8 = int_to_ptr.vmem [resolvable:$true] %s13_s8 }
   0x2   :  { %16 = dma.vmem_to_smem %s14_s8, 16, %s79_s9, [#allocation3]  }
   0x3   :  { %75 = dma.done.wait [#allocation3], 16  }
   0x4   :  { %76 = vsyncadd [#allocation3], 4294967280 }
   0x5   :  { %21 = sfence }
   0x6   :  { %s22_s10 = sld [smem:[#allocation2]]  ;;  %s36_s15 = sshll.u32 %s98_s1, 4  ;;  %s37_s15 = int_to_ptr.vmem [resolvable:$true] %s36_s15 }
   0x7   :  { %s47_s11 = sld [smem:[#allocation2 + $0x1]]  ;;  %s80_s16 = smov [#allocation5]  }
   0x8   :  { %s48_s12 = sld [smem:[#allocation2 + $0x2]] }
   0xc   :  { %24 = sst [smem:[#allocation5]] %s22_s10 }
   0xd   :  { %27 = sst [smem:[#allocation5 + $0x1]] %s47_s11 }
   0xe   :  { %30 = sst [smem:[#allocation5 + $0x2]] %s48_s12 }
   0xf   :  { %39 = dma.smem_to_vmem %s80_s16, 16, %s37_s15, [#allocation4]  }
  0x10   :  { %77 = dma.done.wait [#allocation4], 16  }
  0x11   :  { %78 = vsyncadd [#allocation4], 4294967280 }
  0x12   :  { %44 = sfence }
  0x13   :  { %45 = vsyncpa [#allocation3], 1 }
  0x14   :  { %46 = vsyncpa [#allocation4], 1 }

</bundles_post_ra>
